<compile_context>
chip_gen: v6e
topology: v6e:2x2x1
jax: 0.10.0
libtpu: 0.0.40
codegen_flags: <defaults>
</compile_context>

<pallas_src>
import functools

import jax
import jax.numpy as jnp
from jax.experimental import pallas as pl
from jax.experimental.pallas import tpu as pltpu


def _view_weight_kernel(*refs, num_views):
    """refs = (z_0..z_{V-1}, w_0..w_{V-1}, bias(V,U), out(tn,U)).

    alpha is already folded into w_v / bias rows, so the view combine is a sum.
    """
    z_refs = refs[:num_views]
    w_refs = refs[num_views:2 * num_views]
    b_ref = refs[2 * num_views]
    u_ref = refs[2 * num_views + 1]

    acc = None
    for v in range(num_views):
        # Cast Z tile to bf16 in VMEM (no extra HBM pass); f32 MXU accumulation.
        zv = z_refs[v][...].astype(jnp.bfloat16)
        yv = jnp.dot(zv, w_refs[v][...], preferred_element_type=jnp.float32)
        yv = yv + b_ref[v:v + 1, :]            # (1, U) broadcast over rows, f32
        yv = jnp.where(yv > 0, yv, 0.01 * yv)  # LeakyReLU(negative_slope=0.01)
        acc = yv if acc is None else acc + yv
    u_ref[...] = acc                            # direct (tn, U_dim) f32 store


def _pick_row_tile(n, row_tile):
    """Row tile: large for bandwidth, but >=2-4 grid steps when n allows (v7x)."""
    tn = min(row_tile, n)
    if n >= 16:
        quarter = -(-n // 4)                    # cdiv(n, 4)
        quarter = ((quarter + 7) // 8) * 8      # keep sublane-aligned (8)
        tn = min(tn, max(8, quarter))
    return tn


@functools.partial(jax.jit, static_argnames=("row_tile",))
def view_weight_forward(alpha, z_list, w_list, b_list, *, row_tile=1024):
    """alpha: (V,); z_list[v]: (N, Zdim_v) f32; w_list[v]: (Zdim_v, U); b_list[v]: (U,)."""
    num_views = len(z_list)
    n = z_list[0].shape[0]
    u_dim = w_list[0].shape[1]
    z_dims = [z.shape[1] for z in z_list]
    z_tot = sum(z_dims)

    # softmax over the (tiny) view axis — glue, not the hot path.
    alpha_n = jax.nn.softmax(alpha, axis=0)

    # Fold alpha into weights/bias (valid: alpha_n > 0, LeakyReLU pos.-homog.).
    # Scale in f32, then cast weights to bf16 for the MXU; bias stays f32.
    # TODO(synk): for inference with static alpha, hoist this fold/cast out of
    # the per-call path (it is a tiny (z_tot x U) op either way).
    w_scaled = [(alpha_n[v] * w_list[v]).astype(jnp.bfloat16)
                for v in range(num_views)]
    b_scaled = jnp.stack([alpha_n[v] * b_list[v] for v in range(num_views)],
                         axis=0)                                   # (V, U) f32

    tn = _pick_row_tile(n, row_tile)
    grid = (pl.cdiv(n, tn),)

    cost = pl.CostEstimate(
        flops=2 * n * z_tot * u_dim,
        transcendentals=0,
        bytes_accessed=(n * z_tot * 4            # Z read (f32)
                        + z_tot * u_dim * 2      # weights (bf16)
                        + num_views * u_dim * 4  # bias (f32)
                        + n * u_dim * 4),        # output (f32)
    )

    in_specs = (
        [pl.BlockSpec((tn, zd), lambda i: (i, 0)) for zd in z_dims]       # Z_v tiles
        + [pl.BlockSpec((zd, u_dim), lambda i: (0, 0)) for zd in z_dims]  # W_v (whole)
        + [pl.BlockSpec((num_views, u_dim), lambda i: (0, 0))]            # bias
    )

    u = pl.pallas_call(
        functools.partial(_view_weight_kernel, num_views=num_views),
        out_shape=jax.ShapeDtypeStruct((n, u_dim), jnp.float32),
        grid=grid,
        in_specs=in_specs,
        out_specs=pl.BlockSpec((tn, u_dim), lambda i: (i, 0)),
        compiler_params=pltpu.CompilerParams(
            dimension_semantics=("parallel",)),
        cost_estimate=cost,
    )(*z_list, *w_scaled, b_scaled)

    return u, alpha_n


def _reference(alpha, z_list, w_list, b_list):
    alpha_n = jax.nn.softmax(alpha, axis=0)
    u = 0.0
    for v, z_v in enumerate(z_list):
        y = z_v @ w_list[v] + b_list[v]
        y = jnp.where(y > 0, y, 0.01 * y)
        u = u + alpha_n[v] * y
    return u, alpha_n


if __name__ == "__main__":
    num_views = 3
    z_dims = [32, 48, 64]
    u_dim = 32
    n = 16

    key = jax.random.PRNGKey(0)
    keys = jax.random.split(key, 3 * num_views)

    # Deterministic per-view "Linear" parameters (PyTorch-style uniform bounds).
    w_list, b_list, z_list = [], [], []
    for v, zd in enumerate(z_dims):
        bound = 1.0 / (zd ** 0.5)
        w_list.append(jax.random.uniform(keys[3 * v], (zd, u_dim),
                                         minval=-bound, maxval=bound,
                                         dtype=jnp.float32))
        b_list.append(jax.random.uniform(keys[3 * v + 1], (u_dim,),
                                         minval=-bound, maxval=bound,
                                         dtype=jnp.float32))
        z_list.append(jax.random.normal(keys[3 * v + 2], (n, zd),
                                        dtype=jnp.float32))

    alpha = jnp.full((num_views,), 1.0 / num_views, dtype=jnp.float32)

    u, alpha_n = view_weight_forward(alpha, z_list, w_list, b_list)
    u = jax.block_until_ready(u)
    alpha_n = jax.block_until_ready(alpha_n)

    u_ref, alpha_ref_out = _reference(alpha, z_list, w_list, b_list)
    assert u.shape == (n, u_dim) and alpha_n.shape == (num_views,)
    # bf16 MXU inputs (alpha folded into weights) with f32 accumulation vs the
    # pure-f32 reference.
    assert jnp.allclose(u, u_ref, atol=2e-2, rtol=2e-2), \
        float(jnp.max(jnp.abs(u - u_ref)))
    assert jnp.allclose(alpha_n, alpha_ref_out, atol=1e-6)

    print("KERNEL_OK")
</pallas_src>

<mosaic_0001>
module attributes {stable_mosaic.version = 11 : i64} {
  func.func @_view_weight_kernel(%arg0: i32, %arg1: memref<8x32xf32, #tpu.memory_space<vmem>>, %arg2: memref<8x48xf32, #tpu.memory_space<vmem>>, %arg3: memref<8x64xf32, #tpu.memory_space<vmem>>, %arg4: memref<32x32xbf16, #tpu.memory_space<vmem>>, %arg5: memref<48x32xbf16, #tpu.memory_space<vmem>>, %arg6: memref<64x32xbf16, #tpu.memory_space<vmem>>, %arg7: memref<3x32xf32, #tpu.memory_space<vmem>>, %arg8: memref<8x32xf32, #tpu.memory_space<vmem>>) attributes {dimension_semantics = [#tpu.dimension_semantics<parallel>], iteration_bounds = array<i64: 2>, scalar_prefetch = 0 : i64, scratch_operands = 0 : i64, tpu.core_type = #tpu.core_type<tc>, window_params = [{transform_indices = @transform_0, window_bounds = array<i64: 8, 32>}, {transform_indices = @transform_1, window_bounds = array<i64: 8, 48>}, {transform_indices = @transform_2, window_bounds = array<i64: 8, 64>}, {pipeline_mode = #tpu.pipeline_mode<synchronous>, transform_indices = @transform_3, window_bounds = array<i64: 32, 32>}, {pipeline_mode = #tpu.pipeline_mode<synchronous>, transform_indices = @transform_4, window_bounds = array<i64: 48, 32>}, {pipeline_mode = #tpu.pipeline_mode<synchronous>, transform_indices = @transform_5, window_bounds = array<i64: 64, 32>}, {pipeline_mode = #tpu.pipeline_mode<synchronous>, transform_indices = @transform_6, window_bounds = array<i64: 3, 32>}, {transform_indices = @transform_7, window_bounds = array<i64: 8, 32>}]} {
    %c0 = arith.constant 0 : index
    %c0_0 = arith.constant 0 : index
    %0 = vector.load %arg1[%c0, %c0_0] : memref<8x32xf32, #tpu.memory_space<vmem>>, vector<8x32xf32>
    %1 = arith.truncf %0 : vector<8x32xf32> to vector<8x32xbf16>
    %c0_1 = arith.constant 0 : index
    %c0_2 = arith.constant 0 : index
    %2 = vector.load %arg4[%c0_1, %c0_2] : memref<32x32xbf16, #tpu.memory_space<vmem>>, vector<32x32xbf16>
    %cst = arith.constant dense<0.000000e+00> : vector<8x32xf32>
    %3 = tpu.matmul %1, %2, %cst {dimension_numbers = #tpu.dot_dimension_numbers<[1], [0], [0], [1], [0, 0, 1, 1], [], []>} : vector<8x32xbf16>, vector<32x32xbf16>, vector<8x32xf32> -> vector<8x32xf32>
    %c0_3 = arith.constant 0 : index
    %c0_4 = arith.constant 0 : index
    %4 = vector.load %arg7[%c0_3, %c0_4] : memref<3x32xf32, #tpu.memory_space<vmem>>, vector<1x32xf32>
    %5 = vector.broadcast %4 : vector<1x32xf32> to vector<8x32xf32>
    %6 = arith.addf %3, %5 : vector<8x32xf32>
    %cst_5 = arith.constant 0.000000e+00 : f32
    %7 = vector.broadcast %cst_5 : f32 to vector<8x32xf32>
    %8 = arith.cmpf ogt, %6, %7 : vector<8x32xf32>
    %cst_6 = arith.constant 0.00999999977 : f32
    %9 = vector.broadcast %cst_6 : f32 to vector<8x32xf32>
    %10 = arith.mulf %9, %6 : vector<8x32xf32>
    %11 = arith.select %8, %6, %10 : vector<8x32xi1>, vector<8x32xf32>
    %c0_7 = arith.constant 0 : index
    %c0_8 = arith.constant 0 : index
    %12 = vector.load %arg2[%c0_7, %c0_8] : memref<8x48xf32, #tpu.memory_space<vmem>>, vector<8x48xf32>
    %13 = arith.truncf %12 : vector<8x48xf32> to vector<8x48xbf16>
    %c0_9 = arith.constant 0 : index
    %c0_10 = arith.constant 0 : index
    %14 = vector.load %arg5[%c0_9, %c0_10] : memref<48x32xbf16, #tpu.memory_space<vmem>>, vector<48x32xbf16>
    %cst_11 = arith.constant dense<0.000000e+00> : vector<8x32xf32>
    %15 = tpu.matmul %13, %14, %cst_11 {dimension_numbers = #tpu.dot_dimension_numbers<[1], [0], [0], [1], [0, 0, 1, 1], [], []>} : vector<8x48xbf16>, vector<48x32xbf16>, vector<8x32xf32> -> vector<8x32xf32>
    %c1 = arith.constant 1 : index
    %c0_12 = arith.constant 0 : index
    %16 = vector.load %arg7[%c1, %c0_12] : memref<3x32xf32, #tpu.memory_space<vmem>>, vector<1x32xf32>
    %17 = vector.broadcast %16 : vector<1x32xf32> to vector<8x32xf32>
    %18 = arith.addf %15, %17 : vector<8x32xf32>
    %cst_13 = arith.constant 0.000000e+00 : f32
    %19 = vector.broadcast %cst_13 : f32 to vector<8x32xf32>
    %20 = arith.cmpf ogt, %18, %19 : vector<8x32xf32>
    %cst_14 = arith.constant 0.00999999977 : f32
    %21 = vector.broadcast %cst_14 : f32 to vector<8x32xf32>
    %22 = arith.mulf %21, %18 : vector<8x32xf32>
    %23 = arith.select %20, %18, %22 : vector<8x32xi1>, vector<8x32xf32>
    %24 = arith.addf %11, %23 : vector<8x32xf32>
    %c0_15 = arith.constant 0 : index
    %c0_16 = arith.constant 0 : index
    %25 = vector.load %arg3[%c0_15, %c0_16] : memref<8x64xf32, #tpu.memory_space<vmem>>, vector<8x64xf32>
    %26 = arith.truncf %25 : vector<8x64xf32> to vector<8x64xbf16>
    %c0_17 = arith.constant 0 : index
    %c0_18 = arith.constant 0 : index
    %27 = vector.load %arg6[%c0_17, %c0_18] : memref<64x32xbf16, #tpu.memory_space<vmem>>, vector<64x32xbf16>
    %cst_19 = arith.constant dense<0.000000e+00> : vector<8x32xf32>
    %28 = tpu.matmul %26, %27, %cst_19 {dimension_numbers = #tpu.dot_dimension_numbers<[1], [0], [0], [1], [0, 0, 1, 1], [], []>} : vector<8x64xbf16>, vector<64x32xbf16>, vector<8x32xf32> -> vector<8x32xf32>
    %c2 = arith.constant 2 : index
    %c0_20 = arith.constant 0 : index
    %29 = vector.load %arg7[%c2, %c0_20] : memref<3x32xf32, #tpu.memory_space<vmem>>, vector<1x32xf32>
    %30 = vector.broadcast %29 : vector<1x32xf32> to vector<8x32xf32>
    %31 = arith.addf %28, %30 : vector<8x32xf32>
    %cst_21 = arith.constant 0.000000e+00 : f32
    %32 = vector.broadcast %cst_21 : f32 to vector<8x32xf32>
    %33 = arith.cmpf ogt, %31, %32 : vector<8x32xf32>
    %cst_22 = arith.constant 0.00999999977 : f32
    %34 = vector.broadcast %cst_22 : f32 to vector<8x32xf32>
    %35 = arith.mulf %34, %31 : vector<8x32xf32>
    %36 = arith.select %33, %31, %35 : vector<8x32xi1>, vector<8x32xf32>
    %37 = arith.addf %24, %36 : vector<8x32xf32>
    %c0_23 = arith.constant 0 : index
    %c0_24 = arith.constant 0 : index
    %38 = vector.load %arg8[%c0_23, %c0_24] : memref<8x32xf32, #tpu.memory_space<vmem>>, vector<8x32xf32>
    tpu.vector_store %arg8[%c0_23, %c0_24], %37 {strides = array<i32>} : memref<8x32xf32, #tpu.memory_space<vmem>>, vector<8x32xf32>,
    return
  }
  func.func @transform_0(%arg0: i32) -> (i32, i32) {
    %c0_i32 = arith.constant 0 : i32
    %c0_i32_0 = arith.constant 0 : i32
    return %arg0, %c0_i32 : i32, i32
  }
  func.func @transform_1(%arg0: i32) -> (i32, i32) {
    %c0_i32 = arith.constant 0 : i32
    %c0_i32_0 = arith.constant 0 : i32
    return %arg0, %c0_i32 : i32, i32
  }
  func.func @transform_2(%arg0: i32) -> (i32, i32) {
    %c0_i32 = arith.constant 0 : i32
    %c0_i32_0 = arith.constant 0 : i32
    return %arg0, %c0_i32 : i32, i32
  }
  func.func @transform_3(%arg0: i32) -> (i32, i32) {
    %c0_i32 = arith.constant 0 : i32
    %c0_i32_0 = arith.constant 0 : i32
    %c0_i32_1 = arith.constant 0 : i32
    return %c0_i32, %c0_i32_0 : i32, i32
  }
  func.func @transform_4(%arg0: i32) -> (i32, i32) {
    %c0_i32 = arith.constant 0 : i32
    %c0_i32_0 = arith.constant 0 : i32
    %c0_i32_1 = arith.constant 0 : i32
    return %c0_i32, %c0_i32_0 : i32, i32
  }
  func.func @transform_5(%arg0: i32) -> (i32, i32) {
    %c0_i32 = arith.constant 0 : i32
    %c0_i32_0 = arith.constant 0 : i32
    %c0_i32_1 = arith.constant 0 : i32
    return %c0_i32, %c0_i32_0 : i32, i32
  }
  func.func @transform_6(%arg0: i32) -> (i32, i32) {
    %c0_i32 = arith.constant 0 : i32
    %c0_i32_0 = arith.constant 0 : i32
    %c0_i32_1 = arith.constant 0 : i32
    return %c0_i32, %c0_i32_0 : i32, i32
  }
  func.func @transform_7(%arg0: i32) -> (i32, i32) {
    %c0_i32 = arith.constant 0 : i32
    %c0_i32_0 = arith.constant 0 : i32
    return %arg0, %c0_i32 : i32, i32
  }
}

</mosaic_0001>

<bundles_post_ra>
// kernel: view_weight_forward.1
= control target key start
LH: loop header
LB: loop body
LE: loop exit
PB: predicated region body
PF: predicated region fallthrough
CT: control target
= control target key end

     0   :  { %12 = vsyncpa [#allocation3], 0  ;;  %s1005_s0 = inlined_call_operand.vmem [shape: f32[16,32], index: 0, kind: input, shape index: {}]   ;;  %s1006_s1 = inlined_call_operand.vmem [shape: f32[16,48], index: 1, kind: input, shape index: {}]   ;;  %s1007_s2 = inlined_call_operand.vmem [shape: f32[16,64], index: 2, kind: input, shape index: {}]   ;;  %s1008_s3 = inlined_call_operand.vmem [shape: bf16[32,32], index: 3, kind: input, shape index: {}]   ;;  %s1009_s4 = inlined_call_operand.vmem [shape: bf16[48,32], index: 4, kind: input, shape index: {}]   ;;  %s1010_s5 = inlined_call_operand.vmem [shape: bf16[64,32], index: 5, kind: input, shape index: {}]   ;;  %s1011_s6 = inlined_call_operand.vmem [shape: f32[3,32], index: 6, kind: input, shape index: {}]   ;;  %s1012_s7 = inlined_call_operand.hbm [shape: f32[16,32], index: 7, kind: output, shape index: {}]  }
   0x1   :  { %14 = vsyncpa [#allocation3 + $0x1], 0  ;;  %s867_s24 = smov 0   ;;  %s869_s25 = smov 0  }
   0x2   :  { %s871_s26 = smov 0   ;;  %s873_s27 = smov 0  }
   0x3 LB: > { %s888_s28 = sadd.s32 4294967295, %s822_s27   ;;  %s643_s29 = sadd.s32 4294967294, %s822_s27   ;;  %s822_s27 = sphi %s873_s27, %s1018_s27   ;;  %s818_s26 = sphi %s871_s26, %s1017_s26   ;;  %s814_s25 = sphi %s869_s25, %s1016_s25   ;;  %s810_s24 = sphi %s867_s24, %s1015_s24  }
   0x4   : > { %s892_s30 = sadd.s32 1, %s822_s27   ;;  %s189_s8 = sadd.s32 1, %s818_s26 }
   0x5   : > { %s186_s9 = ssub.s32 %s822_s27, %s892_s30  ;;  %p199_p0 = scmp.ne.s32.totalorder %s818_s26, %s814_s25 }
   0x6   : > { %p187_p1 = scmp.eq.s32.totalorder %s186_s9, 0  ;;  %p200_p2 = scmp.eq.s32.totalorder %s888_s28, 1 }
   0x7   : > { %p205_p3 = scmp.ne.s32.totalorder %s814_s25, %s810_s24  ;;  %p206_p4 = scmp.eq.s32.totalorder %s643_s29, 1 }
   0x8   : > { %s903_s10 = scalar_select %p187_p1, %s818_s26, %s189_s8  }
   0x9   : > { %p905_p5 = por %p200_p2, %p199_p0  ;;  %p909_p6 = por %p206_p4, %p205_p3 }
   0xa   : > { %p646_p7 = scmp.ge.s32.totalorder %s822_s27, 1  ;;  %p257_p8 = scmp.lt.s32.totalorder %s822_s27, 3 }
   0xc   : > { %p258_p9 = pnand %p646_p7, %p257_p8 }
   0xd   : > { %p296_p10 = scmp.lt.s32.totalorder (!%p258_p9), %s888_s28, 1  ;;  %s667_s23 = sshll.u32 (!%p258_p9), %s888_s28, 7 }
   0xe   : > { %261 = sbr.rel (%p258_p9) target bundleno = 255 (0xff), region = 48  ;;  %s558_s14 = scalar_lea.hbm (!%p258_p9), %s1012_s7, %s667_s23 }
  0x13   : > { %v753_v0 = vld [vmem:[%s1008_s3 + $0x8] sm:$0xff]   ;;  %v824_v1 = vmov 0.0   ;;  %v754_v2 = vld [vmem:[%s1010_s5 + $0x18] sm:$0xff]   ;;  %v755_v3 = vld [vmem:[%s1008_s3] sm:$0xff]   ;;  %vm825_vm0 = vmmov 0   ;;  %s297_s21 = scalar_select %p296_p10, %s888_s28, 1 }
  0x14   : > { %682 = vmatprep.subr.bf16.mxu1 %v824_v1  ;;  %700 = vmatprep.subr.bf16.mxu0 %v824_v1  ;;  %v756_v4 = vld [vmem:[%s1010_s5 + $0x10] sm:$0xff]   ;;  %v758_v5 = vld [vmem:[%s1010_s5 + $0x8] sm:$0xff]   ;;  %vm332_vm1 = vcmask 261120   ;;  %v760_v9 = vld [vmem:[%s1010_s5] sm:$0xff]   ;;  %vm497_vm2 = vcmask 523264   ;;  %vm410_vm3 = vcmask 392192  }
  0x15   : > { %683 = vmatpush3.bf16.msra.mxu1 %v753_v0  ;;  %686 = vmatprep.mubr.msk.bf16.mxu1 %vm825_vm0, %v824_v1  ;;  %s648_s22 = sshll.u32 %s297_s21, 3  ;;  %v757_v7 = vld [vmem:[%s1009_s4 + $0x10] sm:$0xff]   ;;  %v759_v11 = vld [vmem:[%s1009_s4 + $0x8] sm:$0xff]   ;;  %v761_v13 = vld [vmem:[%s1009_s4] sm:$0xff]   ;;  %s826_s28 = smov [#allocation2]  }
  0x16   : > { %701 = vmatpush3.bf16.msra.mxu0 %v754_v2  ;;  %684 = vmatprep.subr.bf16.mxu1 %v824_v1  ;;  %s299_s8 = scalar_lea.vmem %s1005_s0, %s648_s22  ;;  %s307_s18 = scalar_lea.vmem %s1007_s2, %s648_s22  ;;  %v651_v19 = vld [vmem:[%s1011_s6] ss:$0 sm:$0xff]  ;;  %v660_v22 = vld [vmem:[%s1011_s6 + $0x2] ss:$0 sm:$0xff]  ;;  %v655_v25 = vld [vmem:[%s1011_s6 + $0x1] ss:$0 sm:$0xff] }
  0x17   : > { %702 = vmatprep.subr.bf16.mxu0 %v824_v1  ;;  %708 = vmatprep.mubr.msk.bf16.mxu0 %vm825_vm0, %v824_v1  ;;  %v309_v6 = vld [vmem:[%s299_s8] sm:$0xff]  ;;  %s303_s9 = scalar_lea.vmem %s1006_s1, %s648_s22  ;;  %s766_s16 = sshll.u32 %s826_s28, 4  ;;  %s767_s16 = int_to_ptr.vmem [resolvable:$false] %s766_s16 }
  0x18   : > { %v310_v8 = vpack.c.bf16 %v309_v6, %v309_v6  ;;  %v458_v10 = vld [vmem:[%s307_s18] sm:$0xff]  ;;  %s293_s18 = sand.u32 1, %s814_s25   ;;  %s768_s17 = scalar_lea.vmem %s767_s16, 256 }
  0x19   : > { %685 = vmatpush3.bf16.msra.mxu1 %v755_v3  ;;  %v459_v12 = vpack.c.bf16 %v458_v10, %v458_v10  ;;  %v379_v14 = vld [vmem:[%s303_s9] sm:$0xff]  ;;  %s647_s21 = sshll.u32 %s293_s18, 3  ;;  %s547_s22 = scalar_lea.sflag [#allocation3], %s293_s18 }
  0x1a   : > { %703 = vmatpush3.bf16.msra.mxu0 %v756_v4  ;;  %690 = vmatprep.subr.bf16.mxu1 %v824_v1  ;;  %v380_v15 = vpack.c.bf16 %v379_v14, %v379_v14  ;;  %s295_s29 = scalar_lea.vmem [#allocation2], %s647_s21 }
  0x1b   : > { %704 = vmatprep.subr.bf16.mxu0 %v824_v1  ;;  %s560_s8 = sshll.u32 %s295_s29, 4  ;;  %s561_s8 = int_to_ptr.vmem [resolvable:$true] %s560_s8 }
  0x1c   : > { %687 = vmatmul.mubr.msk.bf16.vlgmr.msra.gmra.mxu1 %vm332_vm1, %v310_v8  ;;  %s762_s15 = scalar_lea.vmem %s561_s8, 128  ;;  %p769_p0 = scmp.lt.s32.totalorder %s561_s8, %s767_s16 }
  0x1d   : > { %691 = vmatpush3.bf16.msra.mxu1 %v757_v7  ;;  %696 = vmatprep.mubr.msk.bf16.mxu1 %vm825_vm0, %v824_v1  ;;  %p763_p11 = scmp.ne.s32.totalorder %s561_s8, %s762_s15  ;;  %p770_p1 = scmp.lt.s32.totalorder %s768_s17, %s762_s15 }
  0x1e   : > { %705 = vmatpush3.bf16.msra.mxu0 %v758_v5  ;;  %692 = vmatprep.subr.bf16.mxu1 %v824_v1 }
  0x1f   : > { %706 = vmatprep.subr.bf16.mxu0 %v824_v1  ;;  %p764_p12 = pnand %p763_p11, %p905_p5  ;;  %p771_p2 = por %p770_p1, %p769_p0 }
  0x21   : > { %693 = vmatpush3.bf16.msra.mxu1 %v759_v11  ;;  %p765_p13 = pneg %p764_p12 }
  0x22   : > { %707 = vmatpush3.bf16.msra.mxu0 %v760_v9  ;;  %694 = vmatprep.subr.bf16.mxu1 %v824_v1 }
  0x23   : > { %p772_p3 = pnand %p771_p2, %p765_p13 }
  0x25   : > { %709 = vmatmul.mubr.msk.bf16.vlgmr.msra.gmra.mxu0 %vm497_vm2, %v459_v12  ;;  %695 = vmatpush3.bf16.msra.mxu1 %v761_v13 }
  0x28   : > { %697 = vmatmul.mubr.msk.bf16.vlgmr.msra.gmra.mxu1 %vm410_vm3, %v380_v15 }
  0xdc   : > { %v370_v16 = vpop.f32.mrf.mxu1 }
  0xdd   : > { %v371_v23 = vadd.f32 %v651_v19, %v370_v16 }
  0xde   : > { %v688_v17 = vpop.f32.mrf.mxu1 }
  0xdf   : > { %v377_v29 = vmul.f32 0.01, %v371_v23  ;;  %vm376_vm4 = vcmp.gt.f32.partialorder %v371_v23, 0.0 }
  0xe0   : > { %v373_v18 = vpop.f32.mrf.mxu1 }
  0xe1   : > { %v378_v36 = vsel %vm376_vm4, %v371_v23, %v377_v29 }
  0xe2   : > { %v689_v20 = vpop.f32.mrf.mxu1 }
  0xe5   : > { %v535_v21 = vpop.f32.mrf.mxu0 }
  0xe6   : > { %v536_v26 = vadd.f32 %v660_v22, %v535_v21 }
  0xe7   : > { %v710_v24 = vpop.f32.mrf.mxu0 }
  0xe8   : > { %v448_v28 = vpop.f32.mrf.mxu1  ;;  %v542_v33 = vmul.f32 0.01, %v536_v26  ;;  %vm541_vm6 = vcmp.gt.f32.partialorder %v536_v26, 0.0 }
  0xe9   : > { %v538_v27 = vpop.f32.mrf.mxu0  ;;  %v449_v30 = vadd.f32 %v655_v25, %v448_v28 }
  0xea   : > { %v698_v32 = vpop.f32.mrf.mxu1  ;;  %v543_v40 = vsel %vm541_vm6, %v536_v26, %v542_v33 }
  0xeb   : > { %v711_v31 = vpop.f32.mrf.mxu0  ;;  %vm454_vm5 = vcmp.gt.f32.partialorder %v449_v30, 0.0  ;;  %v455_v34 = vmul.f32 0.01, %v449_v30 }
  0xec   : > { %v451_v35 = vpop.f32.mrf.mxu1 }
  0xed   : > { %v456_v37 = vsel %vm454_vm5, %v449_v30, %v455_v34 }
  0xee   : > { %v457_v38 = vadd.f32 %v456_v37, %v378_v36  ;;  %v699_v39 = vpop.f32.mrf.mxu1 }
  0xf0   : > { %v544_v41 = vadd.f32 %v543_v40, %v457_v38 }
  0xf2   : > { %545 = vst.msk [vmem:[%s295_s29] sm:$0xff] %vm332_vm1, %v544_v41 }
  0xf3   : > { %775 = shalt.err (!%p772_p3)
}
  0xf4   : > { %s776_s19 = scalar_lea.hbm %s558_s14, 128  ;;  %s780_s21 = scalar_lea.hbm %s1012_s7, 256 }
  0xf5   : > { %p777_p4 = scmp.ne.s32.totalorder %s558_s14, %s776_s19  ;;  %p781_p9 = scmp.lt.s32.totalorder %s558_s14, %s1012_s7 }
  0xf6   : > { %p782_p10 = scmp.lt.s32.totalorder %s780_s21, %s776_s19 }
  0xf7   : > { %p778_p7 = pnand %p777_p4, %p905_p5 }
  0xf8   : > { %p783_p11 = por %p782_p10, %p781_p9 }
  0xf9   : > { %p779_p8 = pneg %p778_p7 }
  0xfb   : > { %p784_p12 = pnand %p783_p11, %p779_p8 }
  0xfd   : > { %787 = shalt.err (!%p784_p12)
}
  0xfe   : > { %712 = dma.vmem_to_hbm [thread:$0]  (%p905_p5), %s561_s8, 128, %s558_s14, %s547_s22  }
  0xff PF: > { %p718_p13 = scmp.ge.s32.totalorder %s822_s27, 2  ;;  %s572_s9 = sand.u32 1, %s810_s24  }
 0x100   : > { %s573_s13 = scalar_lea.sflag [#allocation3], %s572_s9 }
 0x101   : > { %p715_p0 = pnand %p718_p13, %p909_p6 }
 0x103   : > { %p716_p1 = pneg %p715_p0 }
 0x105   : > { %805 = dma.done.wait (%p716_p1), %s573_s13, 128  }
 0x106   : > { %807 = vsyncadd (%p716_p1), %s573_s13, 4294967168  ;;  %p17_p2 = scmp.ge.s32.totalorder %s892_s30, 4   ;;  %s1015_s24 = smov %s814_s25 }
 0x107   : > { %s1016_s25 = smov %s818_s26  ;;  %s1017_s26 = smov %s903_s10 }
 0x108   : > { %s1018_s27 = smov %s892_s30  ;;  %19 = sbr.rel (!%p17_p2) target bundleno = 3 (0x3), region = 89 }
 0x10d   :  { %578 = vsyncpa [#allocation3], 1 }
 0x10e   :  { %580 = vsyncpa [#allocation3 + $0x1], 1 }

</bundles_post_ra>
